<compile_context>
chip_gen: v5e
topology: v5e:2x2
jax: 0.10.0
libtpu: 0.0.40
codegen_flags: <defaults>
</compile_context>

<pallas_src>
import functools

import jax
import jax.numpy as jnp
from jax.experimental import pallas as pl
from jax.experimental.pallas import tpu as pltpu


def _round_up(n, m):
    return ((n + m - 1) // m) * m


# ----------------------------- Pallas kernel --------------------------------
def _fwd_kernel(x_ref, y_ref, wt_ref, wrow_ref, mask_ref, m_ref, mx_ref):
    """M = x @ W_top + y * w_y_row ; masked_x = x * mask (two dense outputs)."""
    x = x_ref[...]                                              # (Bt, dims)
    m = (
        jnp.dot(x, wt_ref[...], preferred_element_type=jnp.float32)
        + y_ref[...] * wrow_ref[...]                            # (Bt,1)*(1,dims)
    )
    m_ref[...] = m.astype(m_ref.dtype)
    mx_ref[...] = (x * mask_ref[...]).astype(mx_ref.dtype)


def _pick_b_tile(B, dims):
    # Aim for >=2 grid steps (v7x megacore + pipeline overlap), cap at 512 rows,
    # and keep 6 * b_tile * dims * 4 bytes (x + two outputs, double-buffered)
    # under ~8 MiB so v5e's 16 MiB default scoped VMEM is never a problem.
    budget_rows = max(8, ((8 * 1024 * 1024) // (24 * max(dims, 1))) // 8 * 8)
    cap = min(512, budget_rows)
    half = _round_up(max(1, (B + 1) // 2), 8)
    return max(8, min(cap, half))


def _labeled_pallas(W_top, w_y_row, mask, x, y2):
    B, dims = x.shape
    b_tile = _pick_b_tile(B, dims)
    grid = (pl.cdiv(B, b_tile),)

    # Only raise the scoped-VMEM limit if the double-buffered footprint needs it.
    vmem_est = 4 * (6 * b_tile * dims + 2 * b_tile + 2 * dims * dims + 4 * dims)
    cparams = {"dimension_semantics": ("parallel",)}
    if vmem_est > 12 * 1024 * 1024:
        cparams["vmem_limit_bytes"] = min(vmem_est + (4 << 20), 48 << 20)

    m, mx = pl.pallas_call(
        _fwd_kernel,
        out_shape=(
            jax.ShapeDtypeStruct((B, dims), jnp.float32),   # M
            jax.ShapeDtypeStruct((B, dims), x.dtype),       # masked_x
        ),
        grid=grid,
        in_specs=[
            pl.BlockSpec((b_tile, dims), lambda i: (i, 0)),  # x tile (streamed)
            pl.BlockSpec((b_tile, 1), lambda i: (i, 0)),     # y tile (streamed)
            pl.BlockSpec((dims, dims), lambda i: (0, 0)),    # W_top   (resident)
            pl.BlockSpec((1, dims), lambda i: (0, 0)),       # w_y_row (resident)
            pl.BlockSpec((1, dims), lambda i: (0, 0)),       # mask    (resident)
        ],
        out_specs=(
            pl.BlockSpec((b_tile, dims), lambda i: (i, 0)),
            pl.BlockSpec((b_tile, dims), lambda i: (i, 0)),
        ),
        compiler_params=pltpu.CompilerParams(**cparams),
    )(x, y2, W_top, w_y_row, mask)
    return m, mx


# ------------------------------ jitted wrappers ------------------------------
_PALLAS_MIN_ROWS = 64
_PALLAS_MIN_ELEMS = 16384  # B * dims


def _use_pallas(B, dims):
    return B >= _PALLAS_MIN_ROWS and B * dims >= _PALLAS_MIN_ELEMS


@jax.jit
def _forward_labeled(W_top, w_y_row, mask, x, y):
    """forward(x, y) -> (M[:, :dims], masked_x)."""
    B, dims = x.shape
    y2 = y.astype(x.dtype).reshape(B, 1)
    if _use_pallas(B, dims):
        return _labeled_pallas(W_top, w_y_row, mask, x, y2)
    # Small-size fallback: nanoseconds of VPU/MXU work -> let XLA fuse it,
    # skipping kernel launch + HBM round trips.
    M = x @ W_top + y2 * w_y_row
    masked_x = x * mask
    return M, masked_x


@jax.jit
def _forward_unlabeled(mask_detached, x):
    """forward(x) with y=None: x * detached mask (pure XLA fusion)."""
    return x * mask_detached


# --------------------------------- module -----------------------------------
class NotearsClassifierPallas:
    def __init__(self, dims, num_classes, key):
        self.dims = dims
        self.num_classes = num_classes
        # nn.Parameter(torch.zeros(...)) in the reference; use small deterministic
        # non-zero values so the kernel exercises non-trivial data.
        k1, k2 = jax.random.split(key)
        d1 = dims + 1
        self.weight_pos = 0.05 * jax.random.normal(k1, (d1, d1), jnp.float32)
        self.weight_neg = 0.05 * jax.random.normal(k2, (d1, d1), jnp.float32)
        self._param_cache = None

    # ---- plain-JAX parameter glue (mirrors _adj / _adj_sub) ----
    def _adj(self):
        return self.weight_pos - self.weight_neg

    def _adj_sub(self):
        W = self._adj()
        return jax.scipy.linalg.expm(W * W)

    def invalidate_cache(self):
        """Call after updating weight_pos / weight_neg."""
        self._param_cache = None

    def _params(self):
        # O((d+1)^3) expm precompute, cached per weight update (hoisted out of
        # the per-forward jitted path).
        if self._param_cache is None:
            W = self._adj()
            W_sub = self._adj_sub()
            d = self.dims
            W_top = W[:d, :d]
            w_y_row = W[d, :d].reshape(1, d)
            mask = W_sub[:d, -1].reshape(1, d)
            self._param_cache = (W_top, w_y_row, mask)
        return self._param_cache

    # ---- forward ----
    def forward(self, x, y=None):
        W_top, w_y_row, mask = self._params()
        if y is not None:
            # mask NOT detached here (matches PyTorch labeled branch)
            return _forward_labeled(W_top, w_y_row, mask, x, y)
        # y=None branch detaches the mask (matches PyTorch .detach())
        return _forward_unlabeled(jax.lax.stop_gradient(mask), x)

    def mask_feature(self, x):
        _, _, mask = self._params()
        return _forward_unlabeled(jax.lax.stop_gradient(mask), x)


# ----------------------------------- demo -----------------------------------
if __name__ == "__main__":
    key = jax.random.PRNGKey(0)
    k_param, k_x, k_y, k_x2, k_y2 = jax.random.split(key, 5)

    num_classes = 4

    # ---- Pallas path: batch / dims large enough to engage the kernel ----
    dims = 128
    batch = 256
    model = NotearsClassifierPallas(dims, num_classes, k_param)

    x = jax.random.normal(k_x, (batch, dims), jnp.float32)
    y = jax.random.randint(k_y, (batch,), 0, num_classes).astype(jnp.float32)

    M, masked_x = model.forward(x, y)          # Pallas-backed
    masked_only = model.forward(x)             # unlabeled path (XLA fusion)
    jax.block_until_ready((M, masked_x, masked_only))

    # reference check against pure JAX
    W = model._adj()
    W_sub = model._adj_sub()
    x_aug = jnp.concatenate([x, y[:, None]], axis=1)
    M_ref = (x_aug @ W)[:, :dims]
    mx_ref = x * W_sub[:dims, -1][None, :]
    assert jnp.allclose(M, M_ref, atol=1e-4), "M mismatch (pallas path)"
    assert jnp.allclose(masked_x, mx_ref, atol=1e-5), "masked_x mismatch"
    assert jnp.allclose(masked_only, mx_ref, atol=1e-5), "masked_only mismatch"

    # ---- small-size fallback path (overhead-bound -> XLA fusion) ----
    dims_s, batch_s = 16, 8
    model_s = NotearsClassifierPallas(dims_s, num_classes, k_param)
    xs = jax.random.normal(k_x2, (batch_s, dims_s), jnp.float32)
    ys = jax.random.randint(k_y2, (batch_s,), 0, num_classes).astype(jnp.float32)
    Ms, mxs = model_s.forward(xs, ys)
    jax.block_until_ready((Ms, mxs))

    Ws = model_s._adj()
    Ws_sub = model_s._adj_sub()
    xs_aug = jnp.concatenate([xs, ys[:, None]], axis=1)
    assert jnp.allclose(Ms, (xs_aug @ Ws)[:, :dims_s], atol=1e-5), "small M mismatch"
    assert jnp.allclose(mxs, xs * Ws_sub[:dims_s, -1][None, :], atol=1e-5), \
        "small masked_x mismatch"

    print("KERNEL_OK")
</pallas_src>

<mosaic_0001>
module attributes {stable_mosaic.version = 11 : i64} {
  func.func @_fwd_kernel(%arg0: i32, %arg1: memref<128x128xf32, #tpu.memory_space<vmem>>, %arg2: memref<128x1xf32, #tpu.memory_space<vmem>>, %arg3: memref<128x128xf32, #tpu.memory_space<vmem>>, %arg4: memref<1x128xf32, #tpu.memory_space<vmem>>, %arg5: memref<1x128xf32, #tpu.memory_space<vmem>>, %arg6: memref<128x128xf32, #tpu.memory_space<vmem>>, %arg7: memref<128x128xf32, #tpu.memory_space<vmem>>) attributes {dimension_semantics = [#tpu.dimension_semantics<parallel>], iteration_bounds = array<i64: 2>, scalar_prefetch = 0 : i64, scratch_operands = 0 : i64, tpu.core_type = #tpu.core_type<tc>, window_params = [{transform_indices = @transform_0, window_bounds = array<i64: 128, 128>}, {transform_indices = @transform_1, window_bounds = array<i64: 128, 1>}, {pipeline_mode = #tpu.pipeline_mode<synchronous>, transform_indices = @transform_2, window_bounds = array<i64: 128, 128>}, {pipeline_mode = #tpu.pipeline_mode<synchronous>, transform_indices = @transform_3, window_bounds = array<i64: 1, 128>}, {pipeline_mode = #tpu.pipeline_mode<synchronous>, transform_indices = @transform_4, window_bounds = array<i64: 1, 128>}, {transform_indices = @transform_5, window_bounds = array<i64: 128, 128>}, {transform_indices = @transform_6, window_bounds = array<i64: 128, 128>}]} {
    %c0 = arith.constant 0 : index
    %c0_0 = arith.constant 0 : index
    %0 = vector.load %arg1[%c0, %c0_0] : memref<128x128xf32, #tpu.memory_space<vmem>>, vector<128x128xf32>
    %c0_1 = arith.constant 0 : index
    %c0_2 = arith.constant 0 : index
    %1 = vector.load %arg3[%c0_1, %c0_2] : memref<128x128xf32, #tpu.memory_space<vmem>>, vector<128x128xf32>
    %cst = arith.constant dense<0.000000e+00> : vector<128x128xf32>
    %2 = tpu.matmul %0, %1, %cst {dimension_numbers = #tpu.dot_dimension_numbers<[1], [0], [0], [1], [0, 0, 1, 1], [], []>} : vector<128x128xf32>, vector<128x128xf32>, vector<128x128xf32> -> vector<128x128xf32>
    %c0_3 = arith.constant 0 : index
    %c0_4 = arith.constant 0 : index
    %3 = vector.load %arg2[%c0_3, %c0_4] : memref<128x1xf32, #tpu.memory_space<vmem>>, vector<128x1xf32>
    %c0_5 = arith.constant 0 : index
    %c0_6 = arith.constant 0 : index
    %4 = vector.load %arg4[%c0_5, %c0_6] : memref<1x128xf32, #tpu.memory_space<vmem>>, vector<1x128xf32>
    %5 = vector.broadcast %3 : vector<128x1xf32> to vector<128x128xf32>
    %6 = vector.broadcast %4 : vector<1x128xf32> to vector<128x128xf32>
    %7 = arith.mulf %5, %6 : vector<128x128xf32>
    %8 = arith.addf %2, %7 : vector<128x128xf32>
    %c0_7 = arith.constant 0 : index
    %c0_8 = arith.constant 0 : index
    %9 = vector.load %arg6[%c0_7, %c0_8] : memref<128x128xf32, #tpu.memory_space<vmem>>, vector<128x128xf32>
    tpu.vector_store %arg6[%c0_7, %c0_8], %8 {strides = array<i32>} : memref<128x128xf32, #tpu.memory_space<vmem>>, vector<128x128xf32>,
    %c0_9 = arith.constant 0 : index
    %c0_10 = arith.constant 0 : index
    %10 = vector.load %arg5[%c0_9, %c0_10] : memref<1x128xf32, #tpu.memory_space<vmem>>, vector<1x128xf32>
    %11 = vector.broadcast %10 : vector<1x128xf32> to vector<128x128xf32>
    %12 = arith.mulf %0, %11 : vector<128x128xf32>
    %c0_11 = arith.constant 0 : index
    %c0_12 = arith.constant 0 : index
    %13 = vector.load %arg7[%c0_11, %c0_12] : memref<128x128xf32, #tpu.memory_space<vmem>>, vector<128x128xf32>
    tpu.vector_store %arg7[%c0_11, %c0_12], %12 {strides = array<i32>} : memref<128x128xf32, #tpu.memory_space<vmem>>, vector<128x128xf32>,
    return
  }
  func.func @transform_0(%arg0: i32) -> (i32, i32) {
    %c0_i32 = arith.constant 0 : i32
    %c0_i32_0 = arith.constant 0 : i32
    return %arg0, %c0_i32 : i32, i32
  }
  func.func @transform_1(%arg0: i32) -> (i32, i32) {
    %c0_i32 = arith.constant 0 : i32
    %c0_i32_0 = arith.constant 0 : i32
    return %arg0, %c0_i32 : i32, i32
  }
  func.func @transform_2(%arg0: i32) -> (i32, i32) {
    %c0_i32 = arith.constant 0 : i32
    %c0_i32_0 = arith.constant 0 : i32
    %c0_i32_1 = arith.constant 0 : i32
    return %c0_i32, %c0_i32_0 : i32, i32
  }
  func.func @transform_3(%arg0: i32) -> (i32, i32) {
    %c0_i32 = arith.constant 0 : i32
    %c0_i32_0 = arith.constant 0 : i32
    %c0_i32_1 = arith.constant 0 : i32
    return %c0_i32, %c0_i32_0 : i32, i32
  }
  func.func @transform_4(%arg0: i32) -> (i32, i32) {
    %c0_i32 = arith.constant 0 : i32
    %c0_i32_0 = arith.constant 0 : i32
    %c0_i32_1 = arith.constant 0 : i32
    return %c0_i32, %c0_i32_0 : i32, i32
  }
  func.func @transform_5(%arg0: i32) -> (i32, i32) {
    %c0_i32 = arith.constant 0 : i32
    %c0_i32_0 = arith.constant 0 : i32
    return %arg0, %c0_i32 : i32, i32
  }
  func.func @transform_6(%arg0: i32) -> (i32, i32) {
    %c0_i32 = arith.constant 0 : i32
    %c0_i32_0 = arith.constant 0 : i32
    return %arg0, %c0_i32 : i32, i32
  }
}

</mosaic_0001>

<bundles_post_ra>
// kernel: _forward_labeled.1
= control target key start
LH: loop header
LB: loop body
LE: loop exit
PB: predicated region body
PF: predicated region fallthrough
CT: control target
= control target key end

     0   :  { %s1325_s0 = inlined_call_operand.vmem [shape: f32[256,128], index: 0, kind: input, shape index: {}]   ;;  %s1326_s1 = inlined_call_operand.vmem [shape: f32[256,1], index: 1, kind: input, shape index: {}]   ;;  %s1327_s2 = inlined_call_operand.hbm [shape: f32[128,128], index: 2, kind: input, shape index: {}]   ;;  %s1328_s3 = inlined_call_operand.vmem [shape: f32[1,128], index: 3, kind: input, shape index: {}]   ;;  %s1329_s4 = inlined_call_operand.vmem [shape: f32[1,128], index: 4, kind: input, shape index: {}]   ;;  %s1330_s5 = inlined_call_operand.hbm [shape: f32[256,128], index: 5, kind: output, shape index: {0}]   ;;  %s1331_s6 = inlined_call_operand.hbm [shape: f32[256,128], index: 6, kind: output, shape index: {1}]  }
   0x1   :  { %1333 = sst [smem:[#allocation11_spill]] %s1325_s0 }
   0x2   :  { %12 = vsyncpa [#allocation3], 0 }
   0x3   :  { %13 = vsyncpa [#allocation4], 0 }
   0x4   :  { %15 = vsyncpa [#allocation4 + $0x1], 0 }
   0x5   :  { %16 = vsyncpa [#allocation7], 0 }
   0x6   :  { %18 = vsyncpa [#allocation7 + $0x1], 0  ;;  %s1032_s21 = smov 0   ;;  %s1034_s22 = smov 0  }
   0x7   :  { %s1036_s23 = smov 0   ;;  %s1038_s24 = smov 0  }
   0x8 LB: > { %s1053_s25 = sadd.s32 4294967295, %s989_s24   ;;  %s726_s26 = sadd.s32 4294967294, %s989_s24   ;;  %s989_s24 = sphi %s1038_s24, %s1341_s24   ;;  %s985_s23 = sphi %s1036_s23, %s1340_s23   ;;  %s981_s22 = sphi %s1034_s22, %s1339_s22   ;;  %s977_s21 = sphi %s1032_s21, %s1338_s21  }
   0x9   : > { %s1057_s27 = sadd.s32 1, %s989_s24   ;;  %s146_s28 = sadd.s32 1, %s985_s23 }
   0xa   : > { %s143_s29 = ssub.s32 %s989_s24, %s1057_s27  ;;  %p156_p0 = scmp.ne.s32.totalorder %s985_s23, %s981_s22 }
   0xb   : > { %p144_p1 = scmp.eq.s32.totalorder %s143_s29, 0  ;;  %p157_p2 = scmp.eq.s32.totalorder %s1053_s25, 1 }
   0xc   : > { %p162_p3 = scmp.ne.s32.totalorder %s981_s22, %s977_s21  ;;  %p163_p4 = scmp.eq.s32.totalorder %s726_s26, 1 }
   0xd   : > { %s1068_s30 = scalar_select %p144_p1, %s985_s23, %s146_s28  }
   0xe   : > { %p1070_p5 = por %p157_p2, %p156_p0  ;;  %p1074_p6 = por %p163_p4, %p162_p3 }
   0xf   : > { %p727_p7 = scmp.ge.s32.totalorder %s989_s24, 1  ;;  %p196_p8 = scmp.lt.s32.totalorder %s989_s24, 3 }
  0x10   : > { %p815_p9 = scmp.eq.s32.totalorder %s1053_s25, 0  ;;  %s207_s11 = sshll.u32 %s1327_s2, 4  ;;  %s208_s11 = int_to_ptr.hbm [resolvable:$true] %s207_s11 }
  0x11   : > { %p197_p10 = pnand %p727_p7, %p196_p8  ;;  %s991_s12 = smov [#allocation2]  }
  0x12   : > { %s209_s13 = sshll.u32 %s991_s12, 4  ;;  %s992_s14 = smov 128   ;;  %s210_s13 = int_to_ptr.vmem [resolvable:$true] %s209_s13 }
  0x13   : > { %p804_p11 = pneg %p197_p10  ;;  %s993_s15 = smov 8  }
  0x14   : > { %249 = sbr.rel (%p197_p10) target bundleno = 228 (0xe4), region = 40 }
  0x15   : > { %p805_p12 = pnand %p815_p9, %p804_p11 }
  0x17   : > { %807 = dma.hbm_to_vmem [thread:$0]  (!%p805_p12), %s208_s11, 2048, %s210_s13, [#allocation3], %s992_s14, %s992_s14, %s993_s15  }
  0x19   : > { %964 = dma.done.wait (%p815_p9), [#allocation3], 2048  }
  0x1a   : > { %966 = vsyncadd (%p815_p9), [#allocation3], 4294965248  ;;  %s734_s16 = sshll.u32 %s1053_s25, 4  ;;  %v994_v0 = vmov 0   ;;  %v335_v2 = vld [vmem:[#allocation2 + $0x78] sm:$0xff]  ;;  %v334_v3 = vld [vmem:[#allocation2 + $0x70] sm:$0xff] }
  0x1b   : > { %856 = vset.pattern.permute.xlu0 %v994_v0  ;;  %p291_p13 = scmp.lt.s32.totalorder %s734_s16, 31  ;;  %857 = vset.pattern.permute.xlu1 %v994_v0  ;;  %v333_v4 = vld [vmem:[#allocation2 + $0x68] sm:$0xff]  ;;  %v332_v6 = vld [vmem:[#allocation2 + $0x60] sm:$0xff]  ;;  %s1099_s26 = sand.u32 1, %s981_s22   ;;  %v331_v8 = vld [vmem:[#allocation2 + $0x58] sm:$0xff] }
  0x1c   : > { %858 = vset.pattern.permute.xlu2 %v994_v0  ;;  %452 = vmatpush.msra.mxu0 %v335_v2  ;;  %s1336_s0 = sld [smem:[#allocation11_spill]]  ;;  %v330_v9 = vld [vmem:[#allocation2 + $0x50] sm:$0xff]  ;;  %s1332_s10 = sshll.u32 %s1099_s26, 7  ;;  %v1111_v10 = vld [vmem:[%s1329_s4] ss:$0 sm:$0xff]  ;;  %v329_v14 = vld [vmem:[#allocation2 + $0x48] sm:$0xff] }
  0x1d   : > { %s1343_s16 = smov (!%p291_p13, %s734_s16), 31  ;;  %748 = vmatpush.msra.mxu1 %v335_v2  ;;  %749 = vmatpush.msra.mxu2 %v335_v2  ;;  %s1139_s13 = scalar_lea.vmem [#allocation6], %s1332_s10  ;;  %v328_v24 = vld [vmem:[#allocation2 + $0x40] sm:$0xff]  ;;  %v327_v30 = vld [vmem:[#allocation2 + $0x38] sm:$0xff]  ;;  %v326_v32 = vld [vmem:[#allocation2 + $0x30] sm:$0xff] }
  0x1e   : > { %s735_s17 = sshll.u32 %s1343_s16, 3  ;;  %750 = vmatpush.msra.mxu3 %v335_v2  ;;  %453 = vmatpush.msra.mxu0 %v334_v3  ;;  %v325_v33 = vld [vmem:[#allocation2 + $0x28] sm:$0xff]  ;;  %v324_v41 = vld [vmem:[#allocation2 + $0x20] sm:$0xff]  ;;  %v323_v45 = vld [vmem:[#allocation2 + $0x18] sm:$0xff]  ;;  %s746_s14 = sshll.u32 %s1053_s25, 7 }
  0x1f   : > { %s1094_s20 = scalar_lea.vmem %s1326_s1, %s735_s17  ;;  %751 = vmatpush.msra.mxu1 %v334_v3  ;;  %752 = vmatpush.msra.mxu2 %v334_v3  ;;  %v322_v46 = vld [vmem:[#allocation2 + $0x10] sm:$0xff]  ;;  %v321_v48 = vld [vmem:[#allocation2 + $0x8] sm:$0xff]  ;;  %v320_v58 = vld [vmem:[#allocation2] sm:$0xff]  ;;  %s604_s18 = sshll.u32 %s1139_s13, 4  ;;  %s605_s18 = int_to_ptr.vmem [resolvable:$true] %s604_s18 }
  0x20   : > { %v336_v1 = vld [vmem:[%s1094_s20] sm:$0xff]  ;;  %v338_v5 = vld [vmem:[%s1094_s20 + $0x10] sm:$0xff]  ;;  %753 = vmatpush.msra.mxu3 %v334_v3  ;;  %454 = vmatpush.msra.mxu0 %v333_v4  ;;  %v337_v7 = vld [vmem:[%s1094_s20 + $0x8] sm:$0xff]  ;;  %s575_s28 = scalar_lea.sflag [#allocation7], %s1099_s26  ;;  %s911_s12 = scalar_lea.hbm %s1331_s6, 256 }
  0x21   : > { %355 = vperm.xlu0 %856, %v336_v1   ;;  %754 = vmatpush.msra.mxu1 %v333_v4  ;;  %v339_v21 = vld [vmem:[%s1094_s20 + $0x18] sm:$0xff]  ;;  %v342_v29 = vld [vmem:[%s1094_s20 + $0x30] sm:$0xff]  ;;  %v345_v44 = vld [vmem:[%s1094_s20 + $0x48] sm:$0xff] }
  0x22   : > { %755 = vmatpush.msra.mxu2 %v333_v4  ;;  %756 = vmatpush.msra.mxu3 %v333_v4  ;;  %s1105_s9 = scalar_lea.vmem %s1336_s0, %s735_s17  ;;  %v343_v37 = vld [vmem:[%s1094_s20 + $0x38] sm:$0xff]  ;;  %v340_v54 = vld [vmem:[%s1094_s20 + $0x20] sm:$0xff]  ;;  %v346_v57 = vld [vmem:[%s1094_s20 + $0x50] sm:$0xff]  ;;  %s603_s17 = scalar_lea.hbm %s1331_s6, %s746_s14 }
  0x23   : > { %365 = vperm.xlu1 %857, %v338_v5   ;;  %455 = vmatpush.msra.mxu0 %v332_v6  ;;  %v1114_v11 = vld [vmem:[%s1105_s9] sm:$0xff]  ;;  %v1134_v20 = vld [vmem:[%s1105_s9 + $0x8] sm:$0xff]  ;;  %v1168_v34 = vld [vmem:[%s1105_s9 + $0x10] sm:$0xff]  ;;  %s606_s19 = sshll.u32 %s603_s17, 4  ;;  %s607_s19 = int_to_ptr.hbm [resolvable:$true] %s606_s19 }
  0x24   : > { %757 = vmatpush.msra.mxu1 %v332_v6  ;;  %758 = vmatpush.msra.mxu2 %v332_v6  ;;  %v1117_v12 = vld [vmem:[%s1105_s9 + $0x20] sm:$0xff]  ;;  %v537_v15 = vmul.f32 %v1111_v10, %v1114_v11  ;;  %v538_v22 = vmul.f32 %v1111_v10, %v1134_v20  ;;  %v1145_v23 = vld [vmem:[%s1105_s9 + $0x28] sm:$0xff]  ;;  %v539_v35 = vmul.f32 %v1111_v10, %v1168_v34  ;;  %v1173_v36 = vld [vmem:[%s1105_s9 + $0x30] sm:$0xff]  ;;  %s905_s29 = sshra.s32 %s607_s19, 4  ;;  %s906_s29 = int_to_ptr.hbm [resolvable:$true] %s905_s29 }
  0x25   : > { %759 = vmatpush.msra.mxu3 %v332_v6  ;;  %456 = vmatpush.msra.mxu0 %v331_v8  ;;  %v1120_v13 = vld [vmem:[%s1105_s9 + $0x40] sm:$0xff]  ;;  %v541_v16 = vmul.f32 %v1111_v10, %v1117_v12  ;;  %v542_v25 = vmul.f32 %v1111_v10, %v1145_v23  ;;  %v1151_v26 = vld [vmem:[%s1105_s9 + $0x48] sm:$0xff]  ;;  %v543_v38 = vmul.f32 %v1111_v10, %v1173_v36  ;;  %v1179_v39 = vld [vmem:[%s1105_s9 + $0x50] sm:$0xff]  ;;  %p912_p3 = scmp.lt.s32.totalorder %s906_s29, %s1331_s6 }
  0x26   : > { %760 = vmatpush.msra.mxu1 %v331_v8  ;;  %761 = vmatpush.msra.mxu2 %v331_v8  ;;  %v545_v17 = vmul.f32 %v1111_v10, %v1120_v13  ;;  %v1129_v18 = vld [vmem:[%s1105_s9 + $0x60] sm:$0xff]  ;;  %553 = vst [vmem:[%s1139_s13] sm:$0xff] %v537_v15  ;;  %v546_v27 = vmul.f32 %v1111_v10, %v1151_v26  ;;  %v1157_v28 = vld [vmem:[%s1105_s9 + $0x68] sm:$0xff]  ;;  %v1182_v40 = vld [vmem:[%s1105_s9 + $0x70] sm:$0xff] }
  0x27   : > { %762 = vmatpush.msra.mxu3 %v331_v8  ;;  %457 = vmatpush.msra.mxu0 %v330_v9  ;;  %v549_v19 = vmul.f32 %v1111_v10, %v1129_v18  ;;  %557 = vst [vmem:[%s1139_s13 + $0x20] sm:$0xff] %v541_v16  ;;  %v550_v31 = vmul.f32 %v1111_v10, %v1157_v28  ;;  %v307_v47 = vld [vmem:[%s1105_s9 + $0x18] sm:$0xff]  ;;  %v348_v59 = vld [vmem:[%s1094_s20 + $0x60] sm:$0xff]  ;;  %v341_v60 = vld [vmem:[%s1094_s20 + $0x28] sm:$0xff] }
  0x28   : > { %763 = vmatpush.msra.mxu1 %v330_v9  ;;  %764 = vmatpush.msra.mxu2 %v330_v9  ;;  %561 = vst [vmem:[%s1139_s13 + $0x40] sm:$0xff] %v545_v17  ;;  %v547_v42 = vmul.f32 %v1111_v10, %v1179_v39  ;;  %v551_v43 = vmul.f32 %v1111_v10, %v1182_v40  ;;  %v311_v50 = vld [vmem:[%s1105_s9 + $0x38] sm:$0xff]  ;;  %v349_v61 = vld [vmem:[%s1094_s20 + $0x68] sm:$0xff]  ;;  %v344_v63 = vld [vmem:[%s1094_s20 + $0x40] sm:$0xff] }
  0x29   : > { %360 = vperm.xlu0 %856, %v337_v7   ;;  %765 = vmatpush.msra.mxu3 %v330_v9  ;;  %565 = vst [vmem:[%s1139_s13 + $0x60] sm:$0xff] %v549_v19  ;;  %v540_v49 = vmul.f32 %v1111_v10, %v307_v47  ;;  %v544_v51 = vmul.f32 %v1111_v10, %v311_v50  ;;  %v315_v52 = vld [vmem:[%s1105_s9 + $0x58] sm:$0xff]  ;;  %v350_v1 = vld [vmem:[%s1094_s20 + $0x70] sm:$0xff] }
  0x2a   : > { %458 = vmatpush.msra.mxu0 %v329_v14  ;;  %766 = vmatpush.msra.mxu1 %v329_v14  ;;  %554 = vst [vmem:[%s1139_s13 + $0x8] sm:$0xff] %v538_v22  ;;  %v319_v53 = vld [vmem:[%s1105_s9 + $0x78] sm:$0xff]  ;;  %v548_v55 = vmul.f32 %v1111_v10, %v315_v52  ;;  %s907_s9 = scalar_lea.hbm %s906_s29, 128 }
  0x2b   : > { %767 = vmatpush.msra.mxu2 %v329_v14  ;;  %768 = vmatpush.msra.mxu3 %v329_v14  ;;  %558 = vst [vmem:[%s1139_s13 + $0x28] sm:$0xff] %v542_v25  ;;  %v552_v56 = vmul.f32 %v1111_v10, %v319_v53  ;;  %v351_v62 = vld [vmem:[%s1094_s20 + $0x78] sm:$0xff]  ;;  %p908_p0 = scmp.ne.s32.totalorder %s906_s29, %s907_s9  ;;  %p913_p4 = scmp.lt.s32.totalorder %s911_s12, %s907_s9 }
  0x2c   : > { %370 = vperm.xlu1 %857, %v339_v21   ;;  %459 = vmatpush.msra.mxu0 %v328_v24  ;;  %562 = vst [vmem:[%s1139_s13 + $0x48] sm:$0xff] %v546_v27  ;;  %v347_v0 = vld [vmem:[%s1094_s20 + $0x58] sm:$0xff] }
  0x2d   : > { %769 = vmatpush.msra.mxu1 %v328_v24  ;;  %770 = vmatpush.msra.mxu2 %v328_v24  ;;  %566 = vst [vmem:[%s1139_s13 + $0x68] sm:$0xff] %v550_v31  ;;  %p909_p1 = pnand %p908_p0, %p1070_p5  ;;  %p914_p7 = por %p913_p4, %p912_p3 }
  0x2e   : > { %771 = vmatpush.msra.mxu3 %v328_v24  ;;  %460 = vmatpush.msra.mxu0 %v327_v30  ;;  %555 = vst [vmem:[%s1139_s13 + $0x10] sm:$0xff] %v539_v35 }
  0x2f   : > { %772 = vmatpush.msra.mxu1 %v327_v30  ;;  %773 = vmatpush.msra.mxu2 %v327_v30  ;;  %559 = vst [vmem:[%s1139_s13 + $0x30] sm:$0xff] %v543_v38  ;;  %p910_p2 = pneg %p909_p1 }
  0x30   : > { %774 = vmatpush.msra.mxu3 %v327_v30  ;;  %461 = vmatpush.msra.mxu0 %v326_v32  ;;  %563 = vst [vmem:[%s1139_s13 + $0x50] sm:$0xff] %v547_v42 }
  0x31   : > { %385 = vperm.xlu0 %856, %v342_v29   ;;  %775 = vmatpush.msra.mxu1 %v326_v32  ;;  %567 = vst [vmem:[%s1139_s13 + $0x70] sm:$0xff] %v551_v43  ;;  %p915_p8 = pnand %p914_p7, %p910_p2 }
  0x32   : > { %776 = vmatpush.msra.mxu2 %v326_v32  ;;  %777 = vmatpush.msra.mxu3 %v326_v32  ;;  %556 = vst [vmem:[%s1139_s13 + $0x18] sm:$0xff] %v540_v49 }
  0x33   : > { %462 = vmatpush.msra.mxu0 %v325_v33  ;;  %778 = vmatpush.msra.mxu1 %v325_v33  ;;  %560 = vst [vmem:[%s1139_s13 + $0x38] sm:$0xff] %v544_v51 }
  0x34   : > { %779 = vmatpush.msra.mxu2 %v325_v33  ;;  %780 = vmatpush.msra.mxu3 %v325_v33  ;;  %564 = vst [vmem:[%s1139_s13 + $0x58] sm:$0xff] %v548_v55 }
  0x35   : > { %390 = vperm.xlu1 %857, %v343_v37   ;;  %463 = vmatpush.msra.mxu0 %v324_v41  ;;  %568 = vst [vmem:[%s1139_s13 + $0x78] sm:$0xff] %v552_v56 }
  0x36   : > { %781 = vmatpush.msra.mxu1 %v324_v41  ;;  %782 = vmatpush.msra.mxu2 %v324_v41 }
  0x37   : > { %783 = vmatpush.msra.mxu3 %v324_v41  ;;  %464 = vmatpush.msra.mxu0 %v323_v45 }
  0x38   : > { %784 = vmatpush.msra.mxu1 %v323_v45  ;;  %785 = vmatpush.msra.mxu2 %v323_v45 }
  0x39   : > { %400 = vperm.xlu0 %856, %v345_v44   ;;  %786 = vmatpush.msra.mxu3 %v323_v45 }
  0x3a   : > { %465 = vmatpush.msra.mxu0 %v322_v46  ;;  %787 = vmatpush.msra.mxu1 %v322_v46 }
  0x3b   : > { %788 = vmatpush.msra.mxu2 %v322_v46  ;;  %789 = vmatpush.msra.mxu3 %v322_v46 }
  0x3c   : > { %466 = vmatpush.msra.mxu0 %v321_v48  ;;  %790 = vmatpush.msra.mxu1 %v321_v48 }
  0x3d   : > { %791 = vmatpush.msra.mxu2 %v321_v48  ;;  %792 = vmatpush.msra.mxu3 %v321_v48 }
  0x3e   : > { %375 = vperm.xlu2 %858, %v340_v54   ;;  %405 = vperm.xlu1 %857, %v346_v57  }
  0x3f   : > { %467 = vmatpush.msra.mxu0 %v320_v58  ;;  %793 = vmatpush.msra.mxu1 %v320_v58 }
  0x40   : > { %794 = vmatpush.msra.mxu2 %v320_v58  ;;  %795 = vmatpush.msra.mxu3 %v320_v58 }
  0x41   : > { %468 = vmatmul.f32.vlgmr.msra.gmra.mxu0 %v1114_v11  ;;  %480 = vmatmul.f32.vlgmr.msra.gmra.mxu1 %v1117_v12 }
  0x42   : > { %492 = vmatmul.f32.vlgmr.msra.gmra.mxu2 %v1120_v13  ;;  %504 = vmatmul.f32.vlgmr.msra.gmra.mxu3 %v1129_v18 }
  0x43   : > { %415 = vperm.xlu0 %856, %v348_v59  }
  0x46   : > { %380 = vperm.xlu2 %858, %v341_v60   ;;  %420 = vperm.xlu1 %857, %v349_v61  }
  0x49   : > { %471 = vmatmul.f32.gmra.mxu0 %v1134_v20  ;;  %483 = vmatmul.f32.gmra.mxu1 %v1145_v23 }
  0x4a   : > { %495 = vmatmul.f32.gmra.mxu2 %v1151_v26  ;;  %507 = vmatmul.f32.gmra.mxu3 %v1157_v28 }
  0x4b   : > { %430 = vperm.xlu0 %856, %v351_v62  }
  0x4e   : > { %395 = vperm.xlu2 %858, %v344_v63  }
  0x51   : > { %474 = vmatmul.f32.gmra.mxu0 %v1168_v34  ;;  %486 = vmatmul.f32.gmra.mxu1 %v1173_v36 }
  0x52   : > { %498 = vmatmul.f32.gmra.mxu2 %v1179_v39  ;;  %510 = vmatmul.f32.gmra.mxu3 %v1182_v40 }
  0x56   : > { %410 = vperm.xlu2 %858, %v347_v0  }
  0x59   : > { %477 = vmatmul.f32.gmra.mxu0 %v307_v47  ;;  %489 = vmatmul.f32.gmra.mxu1 %v311_v50 }
  0x5a   : > { %501 = vmatmul.f32.gmra.mxu2 %v315_v52  ;;  %513 = vmatmul.f32.gmra.mxu3 %v319_v53 }
  0x5e   : > { %425 = vperm.xlu2 %858, %v350_v1  }
  0x5f   : > { %918 = shalt.err (!%p915_p8)
}
  0x60   : > { %s995_s13 = smov 128   ;;  %s996_s15 = smov 8   ;;  %v1250_v11 = vld [vmem:[%s1328_s3] ss:$0 sm:$0xff] }
  0x61   : > { %801 = dma.vmem_to_hbm [thread:$0]  (%p1070_p5), %s605_s18, 2048, %s607_s19, %s575_s28, %s995_s13, %s995_s13, %s996_s15  }
  0x62   : > { %s1337_s16 = sshll.u32 %s1099_s26, 7  ;;  %s586_s28 = scalar_lea.hbm %s1330_s5, %s746_s14 }
  0x63   : > { %s1256_s17 = scalar_lea.vmem [#allocation5], %s1337_s16  ;;  %s589_s9 = sshll.u32 %s586_s28, 4  ;;  %s590_s9 = int_to_ptr.hbm [resolvable:$true] %s589_s9 }
  0x64   : > { %s587_s29 = sshll.u32 %s1256_s17, 4  ;;  %s570_s25 = scalar_lea.sflag [#allocation4], %s1099_s26  ;;  %s588_s29 = int_to_ptr.vmem [resolvable:$true] %s587_s29 }
  0x65   : > { %s933_s14 = sshra.s32 %s590_s9, 4  ;;  %s939_s0 = scalar_lea.hbm %s1330_s5, 256  ;;  %s934_s14 = int_to_ptr.hbm [resolvable:$true] %s933_s14 }
  0x66   : > { %s935_s20 = scalar_lea.hbm %s934_s14, 128  ;;  %p940_p12 = scmp.lt.s32.totalorder %s934_s14, %s1330_s5 }
  0x67   : > { %p936_p9 = scmp.ne.s32.totalorder %s934_s14, %s935_s20  ;;  %p941_p13 = scmp.lt.s32.totalorder %s939_s0, %s935_s20 }
  0x69   : > { %p937_p10 = pnand %p936_p9, %p1070_p5  ;;  %p942_p0 = por %p941_p13, %p940_p12 }
  0x6b   : > { %p938_p11 = pneg %p937_p10 }
  0x6d   : > { %p943_p1 = pnand %p942_p0, %p938_p11 }
  0x93   : > { %v356_v2 = vpop.permute.xlu0 %355 }
  0x94   : > { %v436_v12 = vmul.f32 %v1250_v11, %v356_v2 }
  0x95   : > { %v366_v3 = vpop.permute.xlu1 %365 }
  0x96   : > { %v438_v36 = vmul.f32 %v1250_v11, %v366_v3 }
  0x98   : > { %v376_v5 = vpop.permute.xlu2 %375 }
  0x99   : > { %v440_v13 = vmul.f32 %v1250_v11, %v376_v5 }
  0x9b   : > { %v361_v4 = vpop.permute.xlu0 %360 }
  0x9c   : > { %v437_v22 = vmul.f32 %v1250_v11, %v361_v4 }
  0x9e   : > { %v371_v6 = vpop.permute.xlu1 %370 }
  0x9f   : > { %v439_v49 = vmul.f32 %v1250_v11, %v371_v6 }
  0xa0   : > { %v381_v8 = vpop.permute.xlu2 %380 }
  0xa1   : > { %v441_v25 = vmul.f32 %v1250_v11, %v381_v8 }
  0xa3   : > { %v386_v7 = vpop.permute.xlu0 %385 }
  0xa4   : > { %v442_v39 = vmul.f32 %v1250_v11, %v386_v7 }
  0xa7   : > { %v391_v9 = vpop.permute.xlu1 %390 }
  0xa8   : > { %v396_v14 = vpop.permute.xlu2 %395  ;;  %v443_v52 = vmul.f32 %v1250_v11, %v391_v9 }
  0xa9   : > { %v444_v21 = vmul.f32 %v1250_v11, %v396_v14 }
  0xab   : > { %v401_v10 = vpop.permute.xlu0 %400 }
  0xac   : > { %v445_v35 = vmul.f32 %v1250_v11, %v401_v10 }
  0xb0   : > { %v406_v18 = vpop.permute.xlu1 %405  ;;  %v411_v32 = vpop.permute.xlu2 %410 }
  0xb1   : > { %v446_v48 = vmul.f32 %v1250_v11, %v406_v18  ;;  %v447_v61 = vmul.f32 %v1250_v11, %v411_v32 }
  0xb5   : > { %v416_v20 = vpop.permute.xlu0 %415 }
  0xb6   : > { %v448_v23 = vmul.f32 %v1250_v11, %v416_v20 }
  0xb8   : > { %v421_v34 = vpop.permute.xlu1 %420  ;;  %v426_v47 = vpop.permute.xlu2 %425 }
  0xb9   : > { %v449_v37 = vmul.f32 %v1250_v11, %v421_v34  ;;  %v450_v50 = vmul.f32 %v1250_v11, %v426_v47 }
  0xbd   : > { %v431_v60 = vpop.permute.xlu0 %430 }
  0xbe   : > { %v469_v15 = vpop.f32.mrf.mxu0  ;;  %v481_v17 = vpop.f32.mrf.mxu1  ;;  %v451_v62 = vmul.f32 %v1250_v11, %v431_v60 }
  0xbf   : > { %v470_v16 = vadd.f32 %v469_v15, %v436_v12  ;;  %v482_v19 = vadd.f32 %v481_v17, %v440_v13 }
  0xc1   : > { %517 = vst [vmem:[%s1256_s17] sm:$0xff] %v470_v16 }
  0xc2   : > { %521 = vst [vmem:[%s1256_s17 + $0x20] sm:$0xff] %v482_v19 }
  0xc5   : > { %v493_v24 = vpop.f32.mrf.mxu2  ;;  %v505_v27 = vpop.f32.mrf.mxu3 }
  0xc6   : > { %v494_v26 = vadd.f32 %v493_v24, %v444_v21  ;;  %v472_v28 = vpop.f32.mrf.mxu0  ;;  %v506_v29 = vadd.f32 %v505_v27, %v448_v23  ;;  %v484_v31 = vpop.f32.mrf.mxu1 }
  0xc7   : > { %v473_v30 = vadd.f32 %v472_v28, %v437_v22  ;;  %v485_v33 = vadd.f32 %v484_v31, %v441_v25 }
  0xc8   : > { %525 = vst [vmem:[%s1256_s17 + $0x40] sm:$0xff] %v494_v26 }
  0xc9   : > { %529 = vst [vmem:[%s1256_s17 + $0x60] sm:$0xff] %v506_v29 }
  0xca   : > { %518 = vst [vmem:[%s1256_s17 + $0x8] sm:$0xff] %v473_v30 }
  0xcb   : > { %522 = vst [vmem:[%s1256_s17 + $0x28] sm:$0xff] %v485_v33 }
  0xcd   : > { %v496_v38 = vpop.f32.mrf.mxu2  ;;  %v508_v41 = vpop.f32.mrf.mxu3 }
  0xce   : > { %v497_v40 = vadd.f32 %v496_v38, %v445_v35  ;;  %v475_v42 = vpop.f32.mrf.mxu0  ;;  %v509_v43 = vadd.f32 %v508_v41, %v449_v37  ;;  %v487_v45 = vpop.f32.mrf.mxu1 }
  0xcf   : > { %v476_v44 = vadd.f32 %v475_v42, %v438_v36  ;;  %v488_v46 = vadd.f32 %v487_v45, %v442_v39 }
  0xd0   : > { %526 = vst [vmem:[%s1256_s17 + $0x48] sm:$0xff] %v497_v40 }
  0xd1   : > { %530 = vst [vmem:[%s1256_s17 + $0x68] sm:$0xff] %v509_v43 }
  0xd2   : > { %519 = vst [vmem:[%s1256_s17 + $0x10] sm:$0xff] %v476_v44 }
  0xd3   : > { %523 = vst [vmem:[%s1256_s17 + $0x30] sm:$0xff] %v488_v46 }
  0xd5   : > { %v499_v51 = vpop.f32.mrf.mxu2  ;;  %v511_v54 = vpop.f32.mrf.mxu3 }
  0xd6   : > { %v500_v53 = vadd.f32 %v499_v51, %v446_v48  ;;  %v478_v55 = vpop.f32.mrf.mxu0  ;;  %v512_v56 = vadd.f32 %v511_v54, %v450_v50  ;;  %v490_v58 = vpop.f32.mrf.mxu1 }
  0xd7   : > { %v479_v57 = vadd.f32 %v478_v55, %v439_v49  ;;  %v491_v59 = vadd.f32 %v490_v58, %v443_v52 }
  0xd8   : > { %527 = vst [vmem:[%s1256_s17 + $0x50] sm:$0xff] %v500_v53 }
  0xd9   : > { %531 = vst [vmem:[%s1256_s17 + $0x70] sm:$0xff] %v512_v56 }
  0xda   : > { %520 = vst [vmem:[%s1256_s17 + $0x18] sm:$0xff] %v479_v57 }
  0xdb   : > { %524 = vst [vmem:[%s1256_s17 + $0x38] sm:$0xff] %v491_v59 }
  0xdd   : > { %v502_v63 = vpop.f32.mrf.mxu2  ;;  %v514_v1 = vpop.f32.mrf.mxu3 }
  0xde   : > { %v503_v0 = vadd.f32 %v502_v63, %v447_v61  ;;  %v515_v2 = vadd.f32 %v514_v1, %v451_v62 }
  0xe0   : > { %528 = vst [vmem:[%s1256_s17 + $0x58] sm:$0xff] %v503_v0 }
  0xe1   : > { %532 = vst [vmem:[%s1256_s17 + $0x78] sm:$0xff] %v515_v2 }
  0xe2   : > { %946 = shalt.err (!%p943_p1)
}
  0xe3   : > { %800 = dma.vmem_to_hbm [thread:$0]  (%p1070_p5), %s588_s29, 2048, %s590_s9, %s570_s25, %s995_s13, %s995_s13, %s996_s15  }
  0xe4 PF: > { %p817_p2 = scmp.ge.s32.totalorder %s989_s24, 2  ;;  %s621_s26 = sand.u32 1, %s977_s21  }
  0xe5   : > { %s622_s17 = scalar_lea.sflag [#allocation4], %s621_s26 }
  0xe6   : > { %p809_p3 = pnand %p817_p2, %p1074_p6 }
  0xe8   : > { %p810_p4 = pneg %p809_p3 }
  0xea   : > { %968 = dma.done.wait (%p810_p4), %s622_s17, 2048  }
  0xeb   : > { %970 = vsyncadd (%p810_p4), %s622_s17, 4294965248  ;;  %s632_s18 = scalar_lea.sflag [#allocation7], %s621_s26 }
  0xec   : > { %972 = dma.done.wait (%p810_p4), %s632_s18, 2048  }
  0xed   : > { %974 = vsyncadd (%p810_p4), %s632_s18, 4294965248  ;;  %p21_p5 = scmp.ge.s32.totalorder %s1057_s27, 4   ;;  %s1338_s21 = smov %s981_s22 }
  0xee   : > { %s1339_s22 = smov %s985_s23  ;;  %s1340_s23 = smov %s1068_s30 }
  0xef   : > { %s1341_s24 = smov %s1057_s27  ;;  %23 = sbr.rel (!%p21_p5) target bundleno = 8 (0x8), region = 100 }
  0xf4   :  { %638 = vsyncpa [#allocation3], 1 }
  0xf5   :  { %640 = vsyncpa [#allocation3 + $0x1], 1 }
  0xf6   :  { %641 = vsyncpa [#allocation4], 1 }
  0xf7   :  { %643 = vsyncpa [#allocation4 + $0x1], 1 }
  0xf8   :  { %644 = vsyncpa [#allocation7], 1 }
  0xf9   :  { %646 = vsyncpa [#allocation7 + $0x1], 1 }

</bundles_post_ra>
